<compile_context>
chip_gen: v6e
topology: v6e:2x2x1
jax: 0.10.0
libtpu: 0.0.40
codegen_flags: <defaults>
</compile_context>

<pallas_src>
import functools

import jax
import jax.numpy as jnp
from jax.experimental import pallas as pl
from jax.experimental.pallas import tpu as pltpu


def _rows_partial(p):
    """(rows, wp) -> (8, wp) partial sums via aligned slice adds (VALU only);
    falls back to a full sublane reduce when rows % 8 != 0."""
    rows, _ = p.shape
    if rows % 8 == 0:
        r = p[0:8, :]
        for off in range(8, rows, 8):
            r = r + p[off:off + 8, :]
        return r
    return jnp.sum(p, axis=0, keepdims=True)


def _partial_sums_kernel(masks_ref, sp_ref, st_ref, halo_ref, out_ref, *, bt, th, wp):
    """Per-(batch-block, row-strip) partial sums.

    Writes an (8, wp) tile: rows 0..5 are per-lane partial sums of
      [t*ew, sig*ew, sig*t*ew, t, t*softplus(-x), (1-t)*(x+softplus(-x))]
    (the last two are the pos-weight-dependent / independent BCE pieces).
    """
    mask_l = masks_ref[0:1, :]      # 0 at lane 0 (left image border), 1 elsewhere
    mask_r = masks_ref[1:2, :]      # 0 at lane W_real-1 (right image border)
    valid = masks_ref[2:3, :]       # 1 for real lanes, 0 for W-padding lanes

    row = jax.lax.broadcasted_iota(jnp.int32, (th, 1), 0)
    top_row = row == 0
    bot_row = row == th - 1

    acc = None
    for i in range(bt):             # small static unroll over images in the block
        x = sp_ref[i].astype(jnp.float32)       # (th, wp) logits
        t = st_ref[i].astype(jnp.float32)       # (th, wp) binary target
        halo = halo_ref[i, 0]                   # (4, wp): [top_sum, top_max, bot_sum, bot_max]
        top_sum, top_max = halo[0:1, :], halo[1:2, :]
        bot_sum, bot_max = halo[2:3, :], halo[3:4, :]

        # ---- separable 3x3 stride-1 pad-1 pooling, horizontal pass ----
        # zero-masked neighbors serve both the avg (zero pad, count_include_pad)
        # and the max (targets are >= 0, center always included) pools.
        t_l = pltpu.roll(t, shift=1, axis=1) * mask_l
        t_r = pltpu.roll(t, shift=wp - 1, axis=1) * mask_r
        hsum = t + t_l + t_r
        hmax = jnp.maximum(t, jnp.maximum(t_l, t_r))

        # ---- vertical pass; strip-boundary rows come from precomputed halos ----
        hs_u = jnp.where(top_row, top_sum, pltpu.roll(hsum, shift=1, axis=0))
        hs_d = jnp.where(bot_row, bot_sum, pltpu.roll(hsum, shift=th - 1, axis=0))
        hm_u = jnp.where(top_row, top_max, pltpu.roll(hmax, shift=1, axis=0))
        hm_d = jnp.where(bot_row, bot_max, pltpu.roll(hmax, shift=th - 1, axis=0))
        pool_sum = hsum + hs_u + hs_d
        pool_max = jnp.maximum(hmax, jnp.maximum(hm_u, hm_d))

        # edges = max - sum/9 > 0.1  <=>  9*max - sum > 0.9 (binary targets)
        edge_w = 1.0 + 2.0 * (9.0 * pool_max - pool_sum > 0.9).astype(jnp.float32)

        # shared transcendentals: softplus(-x) for BCE; sigmoid from exp(-|x|)
        # with an approximate EUP reciprocal (one fewer full-precision exp).
        e = jnp.exp(-jnp.abs(x))
        sp_negx = jnp.maximum(-x, 0.0) + jnp.log(1.0 + e)
        sig = jnp.where(x >= 0.0, 1.0, e) * pl.reciprocal(1.0 + e, approx=True)

        tw = t * edge_w
        prods = (
            tw,                                   # sum(t * edge_w)
            sig * edge_w * valid,                 # sum(sig * edge_w)       (pad lanes masked)
            sig * tw,                             # sum(sig * t * edge_w)
            t,                                    # sum(t)
            t * sp_negx,                          # pos-weighted BCE term
            (1.0 - t) * (x + sp_negx) * valid,    # pw-independent BCE term (pad lanes masked)
        )
        part = [_rows_partial(p) for p in prods]
        acc = part if acc is None else [a + p for a, p in zip(acc, part)]

    # single 8->1 sublane reduce per quantity per step, then lane-dense store.
    for k in range(6):
        a = acc[k]
        r = a if a.shape[0] == 1 else jnp.sum(a, axis=0, keepdims=True)
        out_ref[0, 0, k:k + 1, :] = r
    out_ref[0, 0, 6:8, :] = jnp.zeros((2, wp), jnp.float32)


def _finalize_kernel(partials_ref, cls_ref, onehot_ref, w_ref, out_ref, *, n_elem, n_batch):
    """Reduce the per-block partials and finish dice + BCE + classification focal."""
    s = jnp.sum(partials_ref[...], axis=(0, 1))        # (8, Wp)
    sum_tw = jnp.sum(s[0:1, :])
    sum_pw = jnp.sum(s[1:2, :])
    inter = jnp.sum(s[2:3, :])
    sum_t = jnp.sum(s[3:4, :])
    bce_pos = jnp.sum(s[4:5, :])
    bce_neg = jnp.sum(s[5:6, :])

    # edge-weighted dice loss
    dice = (2.0 * inter + 1e-6) / (sum_pw + sum_tw + 1e-6)
    dice = jnp.where(sum_tw > 0.0, dice, 1.0 - (sum_pw > 0.0).astype(jnp.float32))
    dice_loss = 1.0 - dice

    # BCE-with-logits with global pos_weight = exp(-5*mean(t)) + 1
    n = jnp.float32(n_elem)
    pos_w = jnp.exp(-5.0 * sum_t / n) + 1.0
    seg_bce = (pos_w * bce_pos + bce_neg) / n

    # classification focal loss (class-weighted CE, gamma = 2)
    logits = cls_ref[...].astype(jnp.float32)           # (B, C)
    onehot = onehot_ref[...]                             # (B, C)
    w = w_ref[...]                                       # (1, C)
    m = jnp.max(logits, axis=-1, keepdims=True)
    lse = m + jnp.log(jnp.sum(jnp.exp(logits - m), axis=-1, keepdims=True))
    logit_true = jnp.sum(onehot * logits, axis=-1, keepdims=True)
    w_true = jnp.sum(onehot * w, axis=-1, keepdims=True)
    ce = w_true * (lse - logit_true)
    pt = jnp.exp(-ce)
    cls_loss = jnp.sum((1.0 - pt) ** 2 * ce) / jnp.float32(n_batch)

    out_ref[0] = dice_loss + seg_bce + cls_loss


def multitask_loss(seg_pred, cls_pred, seg_target, cls_target, class_weights):
    """seg_pred/seg_target: (B,1,H,W); cls_pred: (B,C); cls_target: (B,) int."""
    B, _, H, W = seg_pred.shape
    C = cls_pred.shape[1]

    sp = seg_pred.reshape(B, H, W)                        # keep native logit dtype
    st = seg_target.reshape(B, H, W).astype(jnp.bfloat16)  # binary 0/1 -> exact in bf16

    # lane-dense width (pad to a multiple of 128); padded lanes are masked out.
    Wp = ((W + 127) // 128) * 128
    if Wp != W:
        sp = jnp.pad(sp, ((0, 0), (0, 0), (0, Wp - W)))
        st = jnp.pad(st, ((0, 0), (0, 0), (0, Wp - W)))

    # ---- tile sizes: TH | H (row strip), Bt | B (images per step) ----
    max_rows = max(8, min(256, (512 * 1024) // (Wp * 4)))
    th = 1
    for d in range(1, H + 1):
        if H % d == 0 and d <= max_rows and d % 8 == 0:
            th = d
    if th < 8:
        th = H          # fallback: whole image per strip when H has no x8 divisor
    ns = H // th

    sp_item = jnp.dtype(sp.dtype).itemsize
    st_item = jnp.dtype(st.dtype).itemsize
    per_img = th * Wp * (sp_item + st_item)
    bt = 1
    for d in range(1, B + 1):
        if B % d == 0 and d <= 8 and d * per_img <= (2 << 20):
            bt = d
    nb = B // bt

    # ---- precompute horizontally-pooled halo rows for the vertical pass ----
    stf = st.astype(jnp.float32)
    zl = jnp.pad(stf, ((0, 0), (0, 0), (1, 0)))[:, :, :Wp]
    zr = jnp.pad(stf, ((0, 0), (0, 0), (0, 1)))[:, :, 1:]
    hsum = stf + zl + zr
    hmax = jnp.maximum(stf, jnp.maximum(zl, zr))
    zrow = jnp.zeros((B, 1, Wp), jnp.float32)
    top_sum = jnp.concatenate([zrow, hsum[:, th - 1::th, :][:, :ns - 1, :]], axis=1)
    top_max = jnp.concatenate([zrow, hmax[:, th - 1::th, :][:, :ns - 1, :]], axis=1)
    bot_sum = jnp.concatenate([hsum[:, th::th, :], zrow], axis=1)
    bot_max = jnp.concatenate([hmax[:, th::th, :], zrow], axis=1)
    halo = jnp.stack([top_sum, top_max, bot_sum, bot_max], axis=2)   # (B, ns, 4, Wp)

    # ---- hoisted boundary / pad-validity masks (resident (8, Wp) input) ----
    lane = jnp.arange(Wp)
    masks = jnp.zeros((8, Wp), jnp.float32)
    masks = masks.at[0].set((lane != 0).astype(jnp.float32))
    masks = masks.at[1].set((lane != W - 1).astype(jnp.float32))
    masks = masks.at[2].set((lane < W).astype(jnp.float32))

    onehot = jax.nn.one_hot(cls_target, C, dtype=jnp.float32)
    w_row = class_weights.reshape(1, C).astype(jnp.float32)

    # per-step VMEM: double-buffered blocks + ~20 live (th, Wp) f32 temporaries.
    plane = th * Wp * 4
    blk_in = bt * th * Wp * (sp_item + st_item) + bt * 4 * Wp * 4 + 8 * Wp * 4
    blk_out = 8 * Wp * 4
    vmem1 = int(min(48 << 20, max(16 << 20, 2 * (blk_in + blk_out) + 24 * plane + (4 << 20))))

    partials = pl.pallas_call(
        functools.partial(_partial_sums_kernel, bt=bt, th=th, wp=Wp),
        out_shape=jax.ShapeDtypeStruct((nb, ns, 8, Wp), jnp.float32),
        grid=(nb, ns),
        in_specs=[
            pl.BlockSpec((8, Wp), lambda b, s: (0, 0)),               # boundary masks (resident)
            pl.BlockSpec((bt, th, Wp), lambda b, s: (b, s, 0)),       # seg logits strip
            pl.BlockSpec((bt, th, Wp), lambda b, s: (b, s, 0)),       # seg target strip (bf16)
            pl.BlockSpec((bt, 1, 4, Wp), lambda b, s: (b, s, 0, 0)),  # halo rows
        ],
        out_specs=pl.BlockSpec((1, 1, 8, Wp), lambda b, s: (b, s, 0, 0)),
        compiler_params=pltpu.CompilerParams(
            dimension_semantics=("parallel", "parallel"),
            vmem_limit_bytes=vmem1),
    )(masks, sp, st, halo)

    part_bytes = nb * ns * 8 * Wp * 4
    vmem2 = int(min(48 << 20, max(8 << 20, 2 * part_bytes + (2 << 20))))
    out = pl.pallas_call(
        functools.partial(_finalize_kernel, n_elem=float(B * H * W), n_batch=B),
        out_shape=jax.ShapeDtypeStruct((1,), jnp.float32),
        grid=(1,),
        in_specs=[
            pl.BlockSpec((nb, ns, 8, Wp), lambda i: (0, 0, 0, 0)),
            pl.BlockSpec((B, C), lambda i: (0, 0)),
            pl.BlockSpec((B, C), lambda i: (0, 0)),
            pl.BlockSpec((1, C), lambda i: (0, 0)),
        ],
        out_specs=pl.BlockSpec(memory_space=pltpu.MemorySpace.SMEM),
        compiler_params=pltpu.CompilerParams(vmem_limit_bytes=vmem2),
    )(partials, cls_pred, onehot, w_row)
    return out[0]


def make_class_weights(class_counts):
    counts = jnp.asarray(class_counts, dtype=jnp.float32)
    w = 1.0 / jnp.sqrt(counts + 1e-6)
    return w / jnp.sum(w)


def reference_loss(seg_pred, cls_pred, seg_target, cls_target, class_weights):
    """Pure-JAX replica of the PyTorch MultiTaskLoss forward for verification."""
    sp = seg_pred[:, 0].astype(jnp.float32)
    st = seg_target[:, 0].astype(jnp.float32)
    B, H, W = sp.shape
    tp0 = jnp.pad(st, ((0, 0), (1, 1), (1, 1)))
    tpn = jnp.pad(st, ((0, 0), (1, 1), (1, 1)), constant_values=-jnp.inf)
    wins0 = [tp0[:, dy:dy + H, dx:dx + W] for dy in range(3) for dx in range(3)]
    winsn = [tpn[:, dy:dy + H, dx:dx + W] for dy in range(3) for dx in range(3)]
    mx = functools.reduce(jnp.maximum, winsn)
    av = sum(wins0) / 9.0
    edge_w = 1.0 + 2.0 * ((mx - av) > 0.1).astype(jnp.float32)
    sig = jax.nn.sigmoid(sp)
    sum_t = jnp.sum(st * edge_w)
    sum_p = jnp.sum(sig * edge_w)
    inter = jnp.sum(sig * st * edge_w)
    dice = (2.0 * inter + 1e-6) / (sum_p + sum_t + 1e-6)
    dice = jnp.where(sum_t > 0, dice, 1.0 - (sum_p > 0).astype(jnp.float32))
    dice_loss = 1.0 - dice
    pw = jnp.exp(-5.0 * jnp.mean(st)) + 1.0
    spn = jax.nn.softplus(-sp)
    bce = jnp.mean(pw * st * spn + (1.0 - st) * (sp + spn))
    logp = jax.nn.log_softmax(cls_pred.astype(jnp.float32), axis=-1)
    ce = -jnp.take_along_axis(logp, cls_target[:, None], axis=-1)[:, 0]
    ce = ce * class_weights[cls_target]
    pt = jnp.exp(-ce)
    cls_loss = jnp.mean((1.0 - pt) ** 2 * ce)
    return dice_loss + bce + cls_loss


if __name__ == "__main__":
    key = jax.random.PRNGKey(0)
    B, C, H, W = 2, 3, 16, 16
    k1, k2, k3, k4 = jax.random.split(key, 4)
    seg_pred = jax.random.normal(k1, (B, 1, H, W), dtype=jnp.float32)
    seg_target = (jax.random.uniform(k2, (B, 1, H, W)) > 0.5).astype(jnp.float32)
    cls_pred = jax.random.normal(k3, (B, C), dtype=jnp.float32)
    cls_target = jax.random.randint(k4, (B,), 0, C)
    class_weights = make_class_weights([10.0, 30.0, 60.0])

    loss = multitask_loss(seg_pred, cls_pred, seg_target, cls_target, class_weights)
    loss = jax.block_until_ready(loss)

    ref = reference_loss(seg_pred, cls_pred, seg_target, cls_target, class_weights)
    # tolerance covers the approximate EUP reciprocal used for sigmoid
    assert jnp.allclose(loss, ref, rtol=2e-3, atol=2e-3), (loss, ref)
    print("KERNEL_OK")
</pallas_src>

<mosaic_0001>
module attributes {stable_mosaic.version = 11 : i64} {
  func.func @_partial_sums_kernel(%arg0: i32, %arg1: i32, %arg2: memref<8x128xf32, #tpu.memory_space<vmem>>, %arg3: memref<2x16x128xf32, #tpu.memory_space<vmem>>, %arg4: memref<2x16x128xbf16, #tpu.memory_space<vmem>>, %arg5: memref<2x1x4x128xf32, #tpu.memory_space<vmem>>, %arg6: memref<1x1x8x128xf32, #tpu.memory_space<vmem>>) attributes {dimension_semantics = [#tpu.dimension_semantics<parallel>, #tpu.dimension_semantics<parallel>], iteration_bounds = array<i64: 1, 1>, scalar_prefetch = 0 : i64, scratch_operands = 0 : i64, tpu.core_type = #tpu.core_type<tc>, window_params = [{pipeline_mode = #tpu.pipeline_mode<synchronous>, transform_indices = @transform_0, window_bounds = array<i64: 8, 128>}, {transform_indices = @transform_1, window_bounds = array<i64: 2, 16, 128>}, {transform_indices = @transform_2, window_bounds = array<i64: 2, 16, 128>}, {transform_indices = @transform_3, window_bounds = array<i64: 2, 1, 4, 128>}, {transform_indices = @transform_4, window_bounds = array<i64: 1, 1, 8, 128>}]} {
    %c0 = arith.constant 0 : index
    %c0_0 = arith.constant 0 : index
    %0 = vector.load %arg2[%c0, %c0_0] : memref<8x128xf32, #tpu.memory_space<vmem>>, vector<1x128xf32>
    %c1 = arith.constant 1 : index
    %c0_1 = arith.constant 0 : index
    %1 = vector.load %arg2[%c1, %c0_1] : memref<8x128xf32, #tpu.memory_space<vmem>>, vector<1x128xf32>
    %c2 = arith.constant 2 : index
    %c0_2 = arith.constant 0 : index
    %2 = vector.load %arg2[%c2, %c0_2] : memref<8x128xf32, #tpu.memory_space<vmem>>, vector<1x128xf32>
    %3 = tpu.iota {dimensions = array<i32: 0>} : vector<16x1xi32>
    %c0_i32 = arith.constant 0 : i32
    %4 = vector.broadcast %c0_i32 : i32 to vector<16x1xi32>
    %5 = arith.cmpi eq, %3, %4 : vector<16x1xi32>
    %c15_i32 = arith.constant 15 : i32
    %6 = vector.broadcast %c15_i32 : i32 to vector<16x1xi32>
    %7 = arith.cmpi eq, %3, %6 : vector<16x1xi32>
    %c0_3 = arith.constant 0 : index
    %c0_4 = arith.constant 0 : index
    %c0_5 = arith.constant 0 : index
    %8 = vector.load %arg3[%c0_3, %c0_4, %c0_5] : memref<2x16x128xf32, #tpu.memory_space<vmem>>, vector<1x16x128xf32>
    %9 = vector.shape_cast %8 : vector<1x16x128xf32> to vector<16x128xf32>
    %c0_6 = arith.constant 0 : index
    %c0_7 = arith.constant 0 : index
    %c0_8 = arith.constant 0 : index
    %10 = vector.load %arg4[%c0_6, %c0_7, %c0_8] : memref<2x16x128xbf16, #tpu.memory_space<vmem>>, vector<1x16x128xbf16>
    %11 = vector.shape_cast %10 : vector<1x16x128xbf16> to vector<16x128xbf16>
    %12 = arith.extf %11 : vector<16x128xbf16> to vector<16x128xf32>
    %c0_9 = arith.constant 0 : index
    %c0_10 = arith.constant 0 : index
    %c0_11 = arith.constant 0 : index
    %c0_12 = arith.constant 0 : index
    %13 = vector.load %arg5[%c0_9, %c0_10, %c0_11, %c0_12] : memref<2x1x4x128xf32, #tpu.memory_space<vmem>>, vector<1x1x4x128xf32>
    %14 = vector.shape_cast %13 : vector<1x1x4x128xf32> to vector<4x128xf32>
    %15 = vector.extract_strided_slice %14 {offsets = [0, 0], sizes = [1, 128], strides = [1, 1]} : vector<4x128xf32> to vector<1x128xf32>
    %16 = vector.extract_strided_slice %14 {offsets = [1, 0], sizes = [1, 128], strides = [1, 1]} : vector<4x128xf32> to vector<1x128xf32>
    %17 = vector.extract_strided_slice %14 {offsets = [2, 0], sizes = [1, 128], strides = [1, 1]} : vector<4x128xf32> to vector<1x128xf32>
    %18 = vector.extract_strided_slice %14 {offsets = [3, 0], sizes = [1, 128], strides = [1, 1]} : vector<4x128xf32> to vector<1x128xf32>
    %c1_i32 = arith.constant 1 : i32
    %19 = tpu.dynamic_rotate %12 by %c1_i32 dim 1 : vector<16x128xf32>, i32 -> vector<16x128xf32>
    %20 = vector.broadcast %0 : vector<1x128xf32> to vector<16x128xf32>
    %21 = arith.mulf %19, %20 : vector<16x128xf32>
    %c127_i32 = arith.constant 127 : i32
    %22 = tpu.dynamic_rotate %12 by %c127_i32 dim 1 : vector<16x128xf32>, i32 -> vector<16x128xf32>
    %23 = vector.broadcast %1 : vector<1x128xf32> to vector<16x128xf32>
    %24 = arith.mulf %22, %23 : vector<16x128xf32>
    %25 = arith.addf %12, %21 : vector<16x128xf32>
    %26 = arith.addf %25, %24 : vector<16x128xf32>
    %27 = arith.maximumf %21, %24 : vector<16x128xf32>
    %28 = arith.maximumf %12, %27 : vector<16x128xf32>
    %c1_i32_13 = arith.constant 1 : i32
    %29 = tpu.dynamic_rotate %26 by %c1_i32_13 dim 0 : vector<16x128xf32>, i32 -> vector<16x128xf32>
    %30 = vector.shape_cast %5 : vector<16x1xi1> to vector<16x1xi1>
    %31 = vector.broadcast %30 : vector<16x1xi1> to vector<16x128xi1>
    %32 = vector.shape_cast %15 : vector<1x128xf32> to vector<1x128xf32>
    %33 = vector.broadcast %32 : vector<1x128xf32> to vector<16x128xf32>
    %34 = arith.select %31, %33, %29 : vector<16x128xi1>, vector<16x128xf32>
    %c15_i32_14 = arith.constant 15 : i32
    %35 = tpu.dynamic_rotate %26 by %c15_i32_14 dim 0 : vector<16x128xf32>, i32 -> vector<16x128xf32>
    %36 = vector.shape_cast %7 : vector<16x1xi1> to vector<16x1xi1>
    %37 = vector.broadcast %36 : vector<16x1xi1> to vector<16x128xi1>
    %38 = vector.shape_cast %17 : vector<1x128xf32> to vector<1x128xf32>
    %39 = vector.broadcast %38 : vector<1x128xf32> to vector<16x128xf32>
    %40 = arith.select %37, %39, %35 : vector<16x128xi1>, vector<16x128xf32>
    %c1_i32_15 = arith.constant 1 : i32
    %41 = tpu.dynamic_rotate %28 by %c1_i32_15 dim 0 : vector<16x128xf32>, i32 -> vector<16x128xf32>
    %42 = vector.shape_cast %5 : vector<16x1xi1> to vector<16x1xi1>
    %43 = vector.broadcast %42 : vector<16x1xi1> to vector<16x128xi1>
    %44 = vector.shape_cast %16 : vector<1x128xf32> to vector<1x128xf32>
    %45 = vector.broadcast %44 : vector<1x128xf32> to vector<16x128xf32>
    %46 = arith.select %43, %45, %41 : vector<16x128xi1>, vector<16x128xf32>
    %c15_i32_16 = arith.constant 15 : i32
    %47 = tpu.dynamic_rotate %28 by %c15_i32_16 dim 0 : vector<16x128xf32>, i32 -> vector<16x128xf32>
    %48 = vector.shape_cast %7 : vector<16x1xi1> to vector<16x1xi1>
    %49 = vector.broadcast %48 : vector<16x1xi1> to vector<16x128xi1>
    %50 = vector.shape_cast %18 : vector<1x128xf32> to vector<1x128xf32>
    %51 = vector.broadcast %50 : vector<1x128xf32> to vector<16x128xf32>
    %52 = arith.select %49, %51, %47 : vector<16x128xi1>, vector<16x128xf32>
    %53 = arith.addf %26, %34 : vector<16x128xf32>
    %54 = arith.addf %53, %40 : vector<16x128xf32>
    %55 = arith.maximumf %46, %52 : vector<16x128xf32>
    %56 = arith.maximumf %28, %55 : vector<16x128xf32>
    %cst = arith.constant 9.000000e+00 : f32
    %57 = vector.broadcast %cst : f32 to vector<16x128xf32>
    %58 = arith.mulf %57, %56 : vector<16x128xf32>
    %59 = arith.subf %58, %54 : vector<16x128xf32>
    %cst_17 = arith.constant 0.899999976 : f32
    %60 = vector.broadcast %cst_17 : f32 to vector<16x128xf32>
    %61 = arith.cmpf ogt, %59, %60 : vector<16x128xf32>
    %62 = arith.extui %61 : vector<16x128xi1> to vector<16x128xi32>
    %63 = arith.sitofp %62 : vector<16x128xi32> to vector<16x128xf32>
    %cst_18 = arith.constant 2.000000e+00 : f32
    %64 = vector.broadcast %cst_18 : f32 to vector<16x128xf32>
    %65 = arith.mulf %64, %63 : vector<16x128xf32>
    %cst_19 = arith.constant 1.000000e+00 : f32
    %66 = vector.broadcast %cst_19 : f32 to vector<16x128xf32>
    %67 = arith.addf %66, %65 : vector<16x128xf32>
    %68 = math.absf %9 : vector<16x128xf32>
    %cst_20 = arith.constant 0.000000e+00 : f32
    %69 = vector.broadcast %cst_20 : f32 to vector<16x128xf32>
    %70 = arith.subf %69, %68 : vector<16x128xf32>
    %71 = math.exp %70 : vector<16x128xf32>
    %cst_21 = arith.constant 0.000000e+00 : f32
    %72 = vector.broadcast %cst_21 : f32 to vector<16x128xf32>
    %73 = arith.subf %72, %9 : vector<16x128xf32>
    %cst_22 = arith.constant 0.000000e+00 : f32
    %74 = vector.broadcast %cst_22 : f32 to vector<16x128xf32>
    %75 = arith.maximumf %73, %74 : vector<16x128xf32>
    %cst_23 = arith.constant 1.000000e+00 : f32
    %76 = vector.broadcast %cst_23 : f32 to vector<16x128xf32>
    %77 = arith.addf %76, %71 : vector<16x128xf32>
    %78 = math.log %77 : vector<16x128xf32>
    %79 = arith.addf %75, %78 : vector<16x128xf32>
    %cst_24 = arith.constant 0.000000e+00 : f32
    %80 = vector.broadcast %cst_24 : f32 to vector<16x128xf32>
    %81 = arith.cmpf oge, %9, %80 : vector<16x128xf32>
    %cst_25 = arith.constant 1.000000e+00 : f32
    %82 = vector.broadcast %cst_25 : f32 to vector<16x128xf32>
    %83 = arith.select %81, %82, %71 : vector<16x128xi1>, vector<16x128xf32>
    %cst_26 = arith.constant 1.000000e+00 : f32
    %84 = vector.broadcast %cst_26 : f32 to vector<16x128xf32>
    %85 = arith.addf %84, %71 : vector<16x128xf32>
    %86 = tpu.reciprocal %85 {approx = true} : vector<16x128xf32> -> vector<16x128xf32>
    %87 = arith.mulf %83, %86 : vector<16x128xf32>
    %88 = arith.mulf %12, %67 : vector<16x128xf32>
    %89 = arith.mulf %87, %67 : vector<16x128xf32>
    %90 = vector.broadcast %2 : vector<1x128xf32> to vector<16x128xf32>
    %91 = arith.mulf %89, %90 : vector<16x128xf32>
    %92 = arith.mulf %87, %88 : vector<16x128xf32>
    %93 = arith.mulf %12, %79 : vector<16x128xf32>
    %cst_27 = arith.constant 1.000000e+00 : f32
    %94 = vector.broadcast %cst_27 : f32 to vector<16x128xf32>
    %95 = arith.subf %94, %12 : vector<16x128xf32>
    %96 = arith.addf %9, %79 : vector<16x128xf32>
    %97 = arith.mulf %95, %96 : vector<16x128xf32>
    %98 = vector.broadcast %2 : vector<1x128xf32> to vector<16x128xf32>
    %99 = arith.mulf %97, %98 : vector<16x128xf32>
    %100 = vector.extract_strided_slice %88 {offsets = [0, 0], sizes = [8, 128], strides = [1, 1]} : vector<16x128xf32> to vector<8x128xf32>
    %101 = vector.extract_strided_slice %88 {offsets = [8, 0], sizes = [8, 128], strides = [1, 1]} : vector<16x128xf32> to vector<8x128xf32>
    %102 = arith.addf %100, %101 : vector<8x128xf32>
    %103 = vector.extract_strided_slice %91 {offsets = [0, 0], sizes = [8, 128], strides = [1, 1]} : vector<16x128xf32> to vector<8x128xf32>
    %104 = vector.extract_strided_slice %91 {offsets = [8, 0], sizes = [8, 128], strides = [1, 1]} : vector<16x128xf32> to vector<8x128xf32>
    %105 = arith.addf %103, %104 : vector<8x128xf32>
    %106 = vector.extract_strided_slice %92 {offsets = [0, 0], sizes = [8, 128], strides = [1, 1]} : vector<16x128xf32> to vector<8x128xf32>
    %107 = vector.extract_strided_slice %92 {offsets = [8, 0], sizes = [8, 128], strides = [1, 1]} : vector<16x128xf32> to vector<8x128xf32>
    %108 = arith.addf %106, %107 : vector<8x128xf32>
    %109 = vector.extract_strided_slice %12 {offsets = [0, 0], sizes = [8, 128], strides = [1, 1]} : vector<16x128xf32> to vector<8x128xf32>
    %110 = vector.extract_strided_slice %12 {offsets = [8, 0], sizes = [8, 128], strides = [1, 1]} : vector<16x128xf32> to vector<8x128xf32>
    %111 = arith.addf %109, %110 : vector<8x128xf32>
    %112 = vector.extract_strided_slice %93 {offsets = [0, 0], sizes = [8, 128], strides = [1, 1]} : vector<16x128xf32> to vector<8x128xf32>
    %113 = vector.extract_strided_slice %93 {offsets = [8, 0], sizes = [8, 128], strides = [1, 1]} : vector<16x128xf32> to vector<8x128xf32>
    %114 = arith.addf %112, %113 : vector<8x128xf32>
    %115 = vector.extract_strided_slice %99 {offsets = [0, 0], sizes = [8, 128], strides = [1, 1]} : vector<16x128xf32> to vector<8x128xf32>
    %116 = vector.extract_strided_slice %99 {offsets = [8, 0], sizes = [8, 128], strides = [1, 1]} : vector<16x128xf32> to vector<8x128xf32>
    %117 = arith.addf %115, %116 : vector<8x128xf32>
    %c1_28 = arith.constant 1 : index
    %c0_29 = arith.constant 0 : index
    %c0_30 = arith.constant 0 : index
    %118 = vector.load %arg3[%c1_28, %c0_29, %c0_30] : memref<2x16x128xf32, #tpu.memory_space<vmem>>, vector<1x16x128xf32>
    %119 = vector.shape_cast %118 : vector<1x16x128xf32> to vector<16x128xf32>
    %c1_31 = arith.constant 1 : index
    %c0_32 = arith.constant 0 : index
    %c0_33 = arith.constant 0 : index
    %120 = vector.load %arg4[%c1_31, %c0_32, %c0_33] : memref<2x16x128xbf16, #tpu.memory_space<vmem>>, vector<1x16x128xbf16>
    %121 = vector.shape_cast %120 : vector<1x16x128xbf16> to vector<16x128xbf16>
    %122 = arith.extf %121 : vector<16x128xbf16> to vector<16x128xf32>
    %c1_34 = arith.constant 1 : index
    %c0_35 = arith.constant 0 : index
    %c0_36 = arith.constant 0 : index
    %c0_37 = arith.constant 0 : index
    %123 = vector.load %arg5[%c1_34, %c0_35, %c0_36, %c0_37] : memref<2x1x4x128xf32, #tpu.memory_space<vmem>>, vector<1x1x4x128xf32>
    %124 = vector.shape_cast %123 : vector<1x1x4x128xf32> to vector<4x128xf32>
    %125 = vector.extract_strided_slice %124 {offsets = [0, 0], sizes = [1, 128], strides = [1, 1]} : vector<4x128xf32> to vector<1x128xf32>
    %126 = vector.extract_strided_slice %124 {offsets = [1, 0], sizes = [1, 128], strides = [1, 1]} : vector<4x128xf32> to vector<1x128xf32>
    %127 = vector.extract_strided_slice %124 {offsets = [2, 0], sizes = [1, 128], strides = [1, 1]} : vector<4x128xf32> to vector<1x128xf32>
    %128 = vector.extract_strided_slice %124 {offsets = [3, 0], sizes = [1, 128], strides = [1, 1]} : vector<4x128xf32> to vector<1x128xf32>
    %c1_i32_38 = arith.constant 1 : i32
    %129 = tpu.dynamic_rotate %122 by %c1_i32_38 dim 1 : vector<16x128xf32>, i32 -> vector<16x128xf32>
    %130 = vector.broadcast %0 : vector<1x128xf32> to vector<16x128xf32>
    %131 = arith.mulf %129, %130 : vector<16x128xf32>
    %c127_i32_39 = arith.constant 127 : i32
    %132 = tpu.dynamic_rotate %122 by %c127_i32_39 dim 1 : vector<16x128xf32>, i32 -> vector<16x128xf32>
    %133 = vector.broadcast %1 : vector<1x128xf32> to vector<16x128xf32>
    %134 = arith.mulf %132, %133 : vector<16x128xf32>
    %135 = arith.addf %122, %131 : vector<16x128xf32>
    %136 = arith.addf %135, %134 : vector<16x128xf32>
    %137 = arith.maximumf %131, %134 : vector<16x128xf32>
    %138 = arith.maximumf %122, %137 : vector<16x128xf32>
    %c1_i32_40 = arith.constant 1 : i32
    %139 = tpu.dynamic_rotate %136 by %c1_i32_40 dim 0 : vector<16x128xf32>, i32 -> vector<16x128xf32>
    %140 = vector.shape_cast %5 : vector<16x1xi1> to vector<16x1xi1>
    %141 = vector.broadcast %140 : vector<16x1xi1> to vector<16x128xi1>
    %142 = vector.shape_cast %125 : vector<1x128xf32> to vector<1x128xf32>
    %143 = vector.broadcast %142 : vector<1x128xf32> to vector<16x128xf32>
    %144 = arith.select %141, %143, %139 : vector<16x128xi1>, vector<16x128xf32>
    %c15_i32_41 = arith.constant 15 : i32
    %145 = tpu.dynamic_rotate %136 by %c15_i32_41 dim 0 : vector<16x128xf32>, i32 -> vector<16x128xf32>
    %146 = vector.shape_cast %7 : vector<16x1xi1> to vector<16x1xi1>
    %147 = vector.broadcast %146 : vector<16x1xi1> to vector<16x128xi1>
    %148 = vector.shape_cast %127 : vector<1x128xf32> to vector<1x128xf32>
    %149 = vector.broadcast %148 : vector<1x128xf32> to vector<16x128xf32>
    %150 = arith.select %147, %149, %145 : vector<16x128xi1>, vector<16x128xf32>
    %c1_i32_42 = arith.constant 1 : i32
    %151 = tpu.dynamic_rotate %138 by %c1_i32_42 dim 0 : vector<16x128xf32>, i32 -> vector<16x128xf32>
    %152 = vector.shape_cast %5 : vector<16x1xi1> to vector<16x1xi1>
    %153 = vector.broadcast %152 : vector<16x1xi1> to vector<16x128xi1>
    %154 = vector.shape_cast %126 : vector<1x128xf32> to vector<1x128xf32>
    %155 = vector.broadcast %154 : vector<1x128xf32> to vector<16x128xf32>
    %156 = arith.select %153, %155, %151 : vector<16x128xi1>, vector<16x128xf32>
    %c15_i32_43 = arith.constant 15 : i32
    %157 = tpu.dynamic_rotate %138 by %c15_i32_43 dim 0 : vector<16x128xf32>, i32 -> vector<16x128xf32>
    %158 = vector.shape_cast %7 : vector<16x1xi1> to vector<16x1xi1>
    %159 = vector.broadcast %158 : vector<16x1xi1> to vector<16x128xi1>
    %160 = vector.shape_cast %128 : vector<1x128xf32> to vector<1x128xf32>
    %161 = vector.broadcast %160 : vector<1x128xf32> to vector<16x128xf32>
    %162 = arith.select %159, %161, %157 : vector<16x128xi1>, vector<16x128xf32>
    %163 = arith.addf %136, %144 : vector<16x128xf32>
    %164 = arith.addf %163, %150 : vector<16x128xf32>
    %165 = arith.maximumf %156, %162 : vector<16x128xf32>
    %166 = arith.maximumf %138, %165 : vector<16x128xf32>
    %cst_44 = arith.constant 9.000000e+00 : f32
    %167 = vector.broadcast %cst_44 : f32 to vector<16x128xf32>
    %168 = arith.mulf %167, %166 : vector<16x128xf32>
    %169 = arith.subf %168, %164 : vector<16x128xf32>
    %cst_45 = arith.constant 0.899999976 : f32
    %170 = vector.broadcast %cst_45 : f32 to vector<16x128xf32>
    %171 = arith.cmpf ogt, %169, %170 : vector<16x128xf32>
    %172 = arith.extui %171 : vector<16x128xi1> to vector<16x128xi32>
    %173 = arith.sitofp %172 : vector<16x128xi32> to vector<16x128xf32>
    %cst_46 = arith.constant 2.000000e+00 : f32
    %174 = vector.broadcast %cst_46 : f32 to vector<16x128xf32>
    %175 = arith.mulf %174, %173 : vector<16x128xf32>
    %cst_47 = arith.constant 1.000000e+00 : f32
    %176 = vector.broadcast %cst_47 : f32 to vector<16x128xf32>
    %177 = arith.addf %176, %175 : vector<16x128xf32>
    %178 = math.absf %119 : vector<16x128xf32>
    %cst_48 = arith.constant 0.000000e+00 : f32
    %179 = vector.broadcast %cst_48 : f32 to vector<16x128xf32>
    %180 = arith.subf %179, %178 : vector<16x128xf32>
    %181 = math.exp %180 : vector<16x128xf32>
    %cst_49 = arith.constant 0.000000e+00 : f32
    %182 = vector.broadcast %cst_49 : f32 to vector<16x128xf32>
    %183 = arith.subf %182, %119 : vector<16x128xf32>
    %cst_50 = arith.constant 0.000000e+00 : f32
    %184 = vector.broadcast %cst_50 : f32 to vector<16x128xf32>
    %185 = arith.maximumf %183, %184 : vector<16x128xf32>
    %cst_51 = arith.constant 1.000000e+00 : f32
    %186 = vector.broadcast %cst_51 : f32 to vector<16x128xf32>
    %187 = arith.addf %186, %181 : vector<16x128xf32>
    %188 = math.log %187 : vector<16x128xf32>
    %189 = arith.addf %185, %188 : vector<16x128xf32>
    %cst_52 = arith.constant 0.000000e+00 : f32
    %190 = vector.broadcast %cst_52 : f32 to vector<16x128xf32>
    %191 = arith.cmpf oge, %119, %190 : vector<16x128xf32>
    %cst_53 = arith.constant 1.000000e+00 : f32
    %192 = vector.broadcast %cst_53 : f32 to vector<16x128xf32>
    %193 = arith.select %191, %192, %181 : vector<16x128xi1>, vector<16x128xf32>
    %cst_54 = arith.constant 1.000000e+00 : f32
    %194 = vector.broadcast %cst_54 : f32 to vector<16x128xf32>
    %195 = arith.addf %194, %181 : vector<16x128xf32>
    %196 = tpu.reciprocal %195 {approx = true} : vector<16x128xf32> -> vector<16x128xf32>
    %197 = arith.mulf %193, %196 : vector<16x128xf32>
    %198 = arith.mulf %122, %177 : vector<16x128xf32>
    %199 = arith.mulf %197, %177 : vector<16x128xf32>
    %200 = vector.broadcast %2 : vector<1x128xf32> to vector<16x128xf32>
    %201 = arith.mulf %199, %200 : vector<16x128xf32>
    %202 = arith.mulf %197, %198 : vector<16x128xf32>
    %203 = arith.mulf %122, %189 : vector<16x128xf32>
    %cst_55 = arith.constant 1.000000e+00 : f32
    %204 = vector.broadcast %cst_55 : f32 to vector<16x128xf32>
    %205 = arith.subf %204, %122 : vector<16x128xf32>
    %206 = arith.addf %119, %189 : vector<16x128xf32>
    %207 = arith.mulf %205, %206 : vector<16x128xf32>
    %208 = vector.broadcast %2 : vector<1x128xf32> to vector<16x128xf32>
    %209 = arith.mulf %207, %208 : vector<16x128xf32>
    %210 = vector.extract_strided_slice %198 {offsets = [0, 0], sizes = [8, 128], strides = [1, 1]} : vector<16x128xf32> to vector<8x128xf32>
    %211 = vector.extract_strided_slice %198 {offsets = [8, 0], sizes = [8, 128], strides = [1, 1]} : vector<16x128xf32> to vector<8x128xf32>
    %212 = arith.addf %210, %211 : vector<8x128xf32>
    %213 = vector.extract_strided_slice %201 {offsets = [0, 0], sizes = [8, 128], strides = [1, 1]} : vector<16x128xf32> to vector<8x128xf32>
    %214 = vector.extract_strided_slice %201 {offsets = [8, 0], sizes = [8, 128], strides = [1, 1]} : vector<16x128xf32> to vector<8x128xf32>
    %215 = arith.addf %213, %214 : vector<8x128xf32>
    %216 = vector.extract_strided_slice %202 {offsets = [0, 0], sizes = [8, 128], strides = [1, 1]} : vector<16x128xf32> to vector<8x128xf32>
    %217 = vector.extract_strided_slice %202 {offsets = [8, 0], sizes = [8, 128], strides = [1, 1]} : vector<16x128xf32> to vector<8x128xf32>
    %218 = arith.addf %216, %217 : vector<8x128xf32>
    %219 = vector.extract_strided_slice %122 {offsets = [0, 0], sizes = [8, 128], strides = [1, 1]} : vector<16x128xf32> to vector<8x128xf32>
    %220 = vector.extract_strided_slice %122 {offsets = [8, 0], sizes = [8, 128], strides = [1, 1]} : vector<16x128xf32> to vector<8x128xf32>
    %221 = arith.addf %219, %220 : vector<8x128xf32>
    %222 = vector.extract_strided_slice %203 {offsets = [0, 0], sizes = [8, 128], strides = [1, 1]} : vector<16x128xf32> to vector<8x128xf32>
    %223 = vector.extract_strided_slice %203 {offsets = [8, 0], sizes = [8, 128], strides = [1, 1]} : vector<16x128xf32> to vector<8x128xf32>
    %224 = arith.addf %222, %223 : vector<8x128xf32>
    %225 = vector.extract_strided_slice %209 {offsets = [0, 0], sizes = [8, 128], strides = [1, 1]} : vector<16x128xf32> to vector<8x128xf32>
    %226 = vector.extract_strided_slice %209 {offsets = [8, 0], sizes = [8, 128], strides = [1, 1]} : vector<16x128xf32> to vector<8x128xf32>
    %227 = arith.addf %225, %226 : vector<8x128xf32>
    %228 = arith.addf %102, %212 : vector<8x128xf32>
    %229 = arith.addf %105, %215 : vector<8x128xf32>
    %230 = arith.addf %108, %218 : vector<8x128xf32>
    %231 = arith.addf %111, %221 : vector<8x128xf32>
    %232 = arith.addf %114, %224 : vector<8x128xf32>
    %233 = arith.addf %117, %227 : vector<8x128xf32>
    %cst_56 = arith.constant dense<0.000000e+00> : vector<128xf32>
    %234 = vector.multi_reduction <add>, %228, %cst_56 [0] : vector<8x128xf32> to vector<128xf32>
    %235 = vector.shape_cast %234 : vector<128xf32> to vector<1x128xf32>
    %c0_57 = arith.constant 0 : index
    %c0_58 = arith.constant 0 : index
    %c0_59 = arith.constant 0 : index
    %c0_60 = arith.constant 0 : index
    %236 = vector.load %arg6[%c0_57, %c0_58, %c0_59, %c0_60] : memref<1x1x8x128xf32, #tpu.memory_space<vmem>>, vector<1x1x1x128xf32>
    %237 = vector.shape_cast %236 : vector<1x1x1x128xf32> to vector<1x128xf32>
    %238 = vector.shape_cast %235 : vector<1x128xf32> to vector<1x1x1x128xf32>
    tpu.vector_store %arg6[%c0_57, %c0_58, %c0_59, %c0_60], %238 {strides = array<i32>} : memref<1x1x8x128xf32, #tpu.memory_space<vmem>>, vector<1x1x1x128xf32>,
    %cst_61 = arith.constant dense<0.000000e+00> : vector<128xf32>
    %239 = vector.multi_reduction <add>, %229, %cst_61 [0] : vector<8x128xf32> to vector<128xf32>
    %240 = vector.shape_cast %239 : vector<128xf32> to vector<1x128xf32>
    %c0_62 = arith.constant 0 : index
    %c0_63 = arith.constant 0 : index
    %c1_64 = arith.constant 1 : index
    %c0_65 = arith.constant 0 : index
    %241 = vector.load %arg6[%c0_62, %c0_63, %c1_64, %c0_65] : memref<1x1x8x128xf32, #tpu.memory_space<vmem>>, vector<1x1x1x128xf32>
    %242 = vector.shape_cast %241 : vector<1x1x1x128xf32> to vector<1x128xf32>
    %243 = vector.shape_cast %240 : vector<1x128xf32> to vector<1x1x1x128xf32>
    tpu.vector_store %arg6[%c0_62, %c0_63, %c1_64, %c0_65], %243 {strides = array<i32>} : memref<1x1x8x128xf32, #tpu.memory_space<vmem>>, vector<1x1x1x128xf32>,
    %cst_66 = arith.constant dense<0.000000e+00> : vector<128xf32>
    %244 = vector.multi_reduction <add>, %230, %cst_66 [0] : vector<8x128xf32> to vector<128xf32>
    %245 = vector.shape_cast %244 : vector<128xf32> to vector<1x128xf32>
    %c0_67 = arith.constant 0 : index
    %c0_68 = arith.constant 0 : index
    %c2_69 = arith.constant 2 : index
    %c0_70 = arith.constant 0 : index
    %246 = vector.load %arg6[%c0_67, %c0_68, %c2_69, %c0_70] : memref<1x1x8x128xf32, #tpu.memory_space<vmem>>, vector<1x1x1x128xf32>
    %247 = vector.shape_cast %246 : vector<1x1x1x128xf32> to vector<1x128xf32>
    %248 = vector.shape_cast %245 : vector<1x128xf32> to vector<1x1x1x128xf32>
    tpu.vector_store %arg6[%c0_67, %c0_68, %c2_69, %c0_70], %248 {strides = array<i32>} : memref<1x1x8x128xf32, #tpu.memory_space<vmem>>, vector<1x1x1x128xf32>,
    %cst_71 = arith.constant dense<0.000000e+00> : vector<128xf32>
    %249 = vector.multi_reduction <add>, %231, %cst_71 [0] : vector<8x128xf32> to vector<128xf32>
    %250 = vector.shape_cast %249 : vector<128xf32> to vector<1x128xf32>
    %c0_72 = arith.constant 0 : index
    %c0_73 = arith.constant 0 : index
    %c3 = arith.constant 3 : index
    %c0_74 = arith.constant 0 : index
    %251 = vector.load %arg6[%c0_72, %c0_73, %c3, %c0_74] : memref<1x1x8x128xf32, #tpu.memory_space<vmem>>, vector<1x1x1x128xf32>
    %252 = vector.shape_cast %251 : vector<1x1x1x128xf32> to vector<1x128xf32>
    %253 = vector.shape_cast %250 : vector<1x128xf32> to vector<1x1x1x128xf32>
    tpu.vector_store %arg6[%c0_72, %c0_73, %c3, %c0_74], %253 {strides = array<i32>} : memref<1x1x8x128xf32, #tpu.memory_space<vmem>>, vector<1x1x1x128xf32>,
    %cst_75 = arith.constant dense<0.000000e+00> : vector<128xf32>
    %254 = vector.multi_reduction <add>, %232, %cst_75 [0] : vector<8x128xf32> to vector<128xf32>
    %255 = vector.shape_cast %254 : vector<128xf32> to vector<1x128xf32>
    %c0_76 = arith.constant 0 : index
    %c0_77 = arith.constant 0 : index
    %c4 = arith.constant 4 : index
    %c0_78 = arith.constant 0 : index
    %256 = vector.load %arg6[%c0_76, %c0_77, %c4, %c0_78] : memref<1x1x8x128xf32, #tpu.memory_space<vmem>>, vector<1x1x1x128xf32>
    %257 = vector.shape_cast %256 : vector<1x1x1x128xf32> to vector<1x128xf32>
    %258 = vector.shape_cast %255 : vector<1x128xf32> to vector<1x1x1x128xf32>
    tpu.vector_store %arg6[%c0_76, %c0_77, %c4, %c0_78], %258 {strides = array<i32>} : memref<1x1x8x128xf32, #tpu.memory_space<vmem>>, vector<1x1x1x128xf32>,
    %cst_79 = arith.constant dense<0.000000e+00> : vector<128xf32>
    %259 = vector.multi_reduction <add>, %233, %cst_79 [0] : vector<8x128xf32> to vector<128xf32>
    %260 = vector.shape_cast %259 : vector<128xf32> to vector<1x128xf32>
    %c0_80 = arith.constant 0 : index
    %c0_81 = arith.constant 0 : index
    %c5 = arith.constant 5 : index
    %c0_82 = arith.constant 0 : index
    %261 = vector.load %arg6[%c0_80, %c0_81, %c5, %c0_82] : memref<1x1x8x128xf32, #tpu.memory_space<vmem>>, vector<1x1x1x128xf32>
    %262 = vector.shape_cast %261 : vector<1x1x1x128xf32> to vector<1x128xf32>
    %263 = vector.shape_cast %260 : vector<1x128xf32> to vector<1x1x1x128xf32>
    tpu.vector_store %arg6[%c0_80, %c0_81, %c5, %c0_82], %263 {strides = array<i32>} : memref<1x1x8x128xf32, #tpu.memory_space<vmem>>, vector<1x1x1x128xf32>,
    %cst_83 = arith.constant 0.000000e+00 : f32
    %264 = vector.broadcast %cst_83 : f32 to vector<2x128xf32>
    %c0_84 = arith.constant 0 : index
    %c0_85 = arith.constant 0 : index
    %c6 = arith.constant 6 : index
    %c0_86 = arith.constant 0 : index
    %265 = vector.load %arg6[%c0_84, %c0_85, %c6, %c0_86] : memref<1x1x8x128xf32, #tpu.memory_space<vmem>>, vector<1x1x2x128xf32>
    %266 = vector.shape_cast %265 : vector<1x1x2x128xf32> to vector<2x128xf32>
    %267 = vector.shape_cast %264 : vector<2x128xf32> to vector<1x1x2x128xf32>
    tpu.vector_store %arg6[%c0_84, %c0_85, %c6, %c0_86], %267 {strides = array<i32>} : memref<1x1x8x128xf32, #tpu.memory_space<vmem>>, vector<1x1x2x128xf32>,
    return
  }
  func.func @transform_0(%arg0: i32, %arg1: i32) -> (i32, i32) {
    %c0_i32 = arith.constant 0 : i32
    %c0_i32_0 = arith.constant 0 : i32
    %c0_i32_1 = arith.constant 0 : i32
    return %c0_i32, %c0_i32_0 : i32, i32
  }
  func.func @transform_1(%arg0: i32, %arg1: i32) -> (i32, i32, i32) {
    %c0_i32 = arith.constant 0 : i32
    %c0_i32_0 = arith.constant 0 : i32
    return %arg0, %arg1, %c0_i32 : i32, i32, i32
  }
  func.func @transform_2(%arg0: i32, %arg1: i32) -> (i32, i32, i32) {
    %c0_i32 = arith.constant 0 : i32
    %c0_i32_0 = arith.constant 0 : i32
    return %arg0, %arg1, %c0_i32 : i32, i32, i32
  }
  func.func @transform_3(%arg0: i32, %arg1: i32) -> (i32, i32, i32, i32) {
    %c0_i32 = arith.constant 0 : i32
    %c0_i32_0 = arith.constant 0 : i32
    %c0_i32_1 = arith.constant 0 : i32
    return %arg0, %arg1, %c0_i32, %c0_i32_0 : i32, i32, i32, i32
  }
  func.func @transform_4(%arg0: i32, %arg1: i32) -> (i32, i32, i32, i32) {
    %c0_i32 = arith.constant 0 : i32
    %c0_i32_0 = arith.constant 0 : i32
    %c0_i32_1 = arith.constant 0 : i32
    return %arg0, %arg1, %c0_i32, %c0_i32_0 : i32, i32, i32, i32
  }
}

</mosaic_0001>

<bundles_post_ra>
// kernel: tpu_custom_call.1
= control target key start
LH: loop header
LB: loop body
LE: loop exit
PB: predicated region body
PF: predicated region fallthrough
CT: control target
= control target key end

     0   :  { %9 = vsyncpa [#allocation3], 0  ;;  %s851_s0 = inlined_call_operand.hbm [shape: f32[8,128], index: 0, kind: input, shape index: {}]   ;;  %s852_s1 = inlined_call_operand.hbm [shape: f32[2,16,128], index: 1, kind: input, shape index: {}]   ;;  %s853_s2 = inlined_call_operand.hbm [shape: bf16[2,16,128], index: 2, kind: input, shape index: {}]   ;;  %s854_s3 = inlined_call_operand.hbm [shape: f32[2,1,4,128], index: 3, kind: input, shape index: {}]   ;;  %s855_s4 = inlined_call_operand.hbm [shape: f32[1,1,8,128], index: 4, kind: output, shape index: {}]  }
   0x1   :  { %10 = vsyncpa [#allocation6], 0 }
   0x2   :  { %11 = vsyncpa [#allocation9], 0 }
   0x3   :  { %12 = vsyncpa [#allocation4], 0  ;;  %s633_s15 = smov [#allocation5]  }
   0x4   :  { %s28_s16 = sshll.u32 %s633_s15, 4  ;;  %s29_s16 = int_to_ptr.vmem [resolvable:$true] %s28_s16 }
   0x5   :  { %s533_s17 = scalar_lea.vmem %s29_s16, 512  ;;  %p538_p1 = scmp.lt.s32.totalorder %s29_s16, %s29_s16 }
   0x6   :  { %p534_p0 = scmp.ne.s32.totalorder %s29_s16, %s533_s17  ;;  %p539_p2 = scmp.lt.s32.totalorder %s533_s17, %s533_s17 }
   0x8   :  { %p540_p3 = por %p539_p2, %p538_p1 }
   0xa   :  { %p541_p4 = pnand %p540_p3, %p534_p0 }
   0xc   :  { %544 = shalt.err (!%p541_p4)
}
   0xd   :  { %s634_s18 = smov 128   ;;  %s635_s19 = smov 8  }
   0xe   :  { %34 = dma.hbm_to_vmem [thread:$0]  %s852_s1, 512, %s29_s16, [#allocation6], %s634_s18, %s634_s18, %s635_s19  }
   0xf   :  { %s636_s22 = smov [#allocation2]   ;;  %s637_s24 = smov [#allocation7]  }
  0x10   :  { %s19_s23 = sshll.u32 %s636_s22, 4  ;;  %s40_s25 = sshll.u32 %s637_s24, 4  ;;  %s20_s23 = int_to_ptr.vmem [resolvable:$true] %s19_s23  ;;  %s41_s25 = int_to_ptr.vmem [resolvable:$true] %s40_s25 }
  0x11   :  { %s553_s26 = scalar_lea.vmem %s20_s23, 128  ;;  %p558_p6 = scmp.lt.s32.totalorder %s20_s23, %s20_s23 }
  0x12   :  { %p554_p5 = scmp.ne.s32.totalorder %s20_s23, %s553_s26  ;;  %p559_p7 = scmp.lt.s32.totalorder %s553_s26, %s553_s26 }
  0x14   :  { %p560_p8 = por %p559_p7, %p558_p6 }
  0x16   :  { %p561_p9 = pnand %p560_p8, %p554_p5 }
  0x18   :  { %564 = shalt.err (!%p561_p9)
}
  0x19   :  { %22 = dma.hbm_to_vmem [thread:$0]  %s851_s0, 128, %s20_s23, [#allocation3]  }
  0x1a   :  { %s573_s29 = scalar_lea.vmem %s41_s25, 256  ;;  %p578_p11 = scmp.lt.s32.totalorder %s41_s25, %s41_s25 }
  0x1b   :  { %p574_p10 = scmp.ne.s32.totalorder %s41_s25, %s573_s29  ;;  %p579_p12 = scmp.lt.s32.totalorder %s573_s29, %s573_s29 }
  0x1d   :  { %p580_p13 = por %p579_p12, %p578_p11 }
  0x1f   :  { %p581_p0 = pnand %p580_p13, %p574_p10 }
  0x21   :  { %584 = shalt.err (!%p581_p0)
}
  0x22   :  { %s638_s1 = smov 64   ;;  %s639_s30 = smov 4  }
  0x23   :  { %46 = dma.hbm_to_vmem [thread:$0]  %s853_s2, 256, %s41_s25, [#allocation6], %s638_s1, %s638_s1, %s639_s30  }
  0x24   :  { %s640_s7 = smov [#allocation8]  }
  0x25   :  { %s52_s8 = sshll.u32 %s640_s7, 4  ;;  %s53_s8 = int_to_ptr.vmem [resolvable:$true] %s52_s8 }
  0x26   :  { %s593_s9 = scalar_lea.vmem %s53_s8, 128  ;;  %p598_p2 = scmp.lt.s32.totalorder %s53_s8, %s53_s8 }
  0x27   :  { %p594_p1 = scmp.ne.s32.totalorder %s53_s8, %s593_s9  ;;  %p599_p3 = scmp.lt.s32.totalorder %s593_s9, %s593_s9 }
  0x29   :  { %p600_p4 = por %p599_p3, %p598_p2 }
  0x2b   :  { %p601_p5 = pnand %p600_p4, %p594_p1 }
  0x2d   :  { %604 = shalt.err (!%p601_p5)
}
  0x2e   :  { %58 = dma.hbm_to_vmem [thread:$0]  %s854_s3, 128, %s53_s8, [#allocation9], %s638_s1, %s638_s1, %s639_s30  }
  0x2f   :  { %625 = dma.done.wait [#allocation3], 128  }
  0x30   :  { %626 = vsyncadd [#allocation3], 4294967168 }
  0x31   :  { %627 = dma.done.wait [#allocation6], 768  }
  0x32   :  { %628 = vsyncadd [#allocation6], 4294966528 }
  0x33   :  { %629 = dma.done.wait [#allocation9], 128  }
  0x34   :  { %630 = vsyncadd [#allocation9], 4294967168  ;;  %v641_v0 = vmov 0.0   ;;  %v466_v1 = vld [vmem:[#allocation7 + $0x8] sm:$0xff]   ;;  %v462_v2 = vld [vmem:[#allocation7] sm:$0xff]   ;;  %s642_s2 = smov 1  }
  0x35   :  { %436 = vst [vmem:[#allocation10 + $0x6] sm:$0x3] %v641_v0  ;;  %v683_v3 = vunpack.c.l.bf16 %v466_v1  ;;  %v685_v4 = vunpack.c.h.bf16 %v466_v1  ;;  %v687_v5 = vunpack.c.l.bf16 %v462_v2  ;;  %v689_v6 = vunpack.c.h.bf16 %v462_v2  ;;  %v691_v7 = vld [vmem:[#allocation5 + $0x10] sm:$0xff]  ;;  %v693_v8 = vld [vmem:[#allocation5 + $0x18] sm:$0xff]  ;;  %v699_v11 = vld [vmem:[#allocation5] sm:$0xff]  ;;  %s643_s3 = smov 127  }
  0x36   :  { %v336_v12 = vand.u32 2147483647, %v691_v7  ;;  %v337_v13 = vand.u32 2147483647, %v693_v8  ;;  %v703_v14 = vld [vmem:[#allocation5 + $0x8] sm:$0xff]  ;;  %vm356_vm0 = vcmp.ge.f32.partialorder %v691_v7, 0.0 }
  0x37   :  { %v491_v9 = vpack.i.bf16 %v685_v4, %v683_v3  ;;  %v481_v10 = vpack.i.bf16 %v689_v6, %v687_v5  ;;  %v188_v15 = vand.u32 2147483647, %v699_v11  ;;  %v189_v18 = vand.u32 2147483647, %v703_v14  ;;  %s644_s11 = smov [#allocation10]  }
  0x38   :  { %v338_v16 = vsub.f32 0.0, %v336_v12  ;;  %v339_v17 = vsub.f32 0.0, %v337_v13  ;;  %vm357_vm1 = vcmp.ge.f32.partialorder %v693_v8, 0.0  ;;  %vm208_vm2 = vcmp.ge.f32.partialorder %v699_v11, 0.0  ;;  %s443_s12 = sshll.u32 %s644_s11, 4  ;;  %s444_s12 = int_to_ptr.vmem [resolvable:$true] %s443_s12 }
  0x39   :  { %492 = vrot.lane.b32.xlu1 %v491_v9, %s642_s2  ;;  %482 = vrot.lane.b32.xlu0 %v481_v10, %s642_s2  ;;  %v190_v19 = vsub.f32 0.0, %v188_v15  ;;  %v191_v22 = vsub.f32 0.0, %v189_v18  ;;  %vm209_vm3 = vcmp.ge.f32.partialorder %v703_v14, 0.0  ;;  %v344_v37 = vsub.f32 0.0, %v691_v7  ;;  %v729_v18 = vld [vmem:[#allocation2 + $0x2] ss:$0 sm:$0xff]  ;;  %p610_p7 = scmp.lt.s32.totalorder %s444_s12, %s444_s12 }
  0x3a   :  { %v340_v20 = vmul.f32 1.442695, %v338_v16  ;;  %v342_v21 = vmul.f32 1.442695, %v339_v17  ;;  %v345_v38 = vsub.f32 0.0, %v693_v8  ;;  %v241_v39 = vadd.f32 %v689_v6, %v687_v5  ;;  %s605_s13 = scalar_lea.vmem %s444_s12, 128 }
  0x3b   :  { %v192_v23 = vmul.f32 1.442695, %v190_v19  ;;  %v194_v24 = vmul.f32 1.442695, %v191_v22  ;;  %v385_v40 = vadd.f32 %v685_v4, %v683_v3  ;;  %v346_v41 = vmax.f32 %v344_v37, 0.0  ;;  %p606_p6 = scmp.ne.s32.totalorder %s444_s12, %s605_s13  ;;  %p611_p8 = scmp.lt.s32.totalorder %s605_s13, %s605_s13 }
  0x3c   :  { %501 = vpow2.f32 %v340_v20  ;;  %v196_v42 = vsub.f32 0.0, %v699_v11  ;;  %v347_v44 = vmax.f32 %v345_v38, 0.0  ;;  %v197_v45 = vsub.f32 0.0, %v703_v14 }
  0x3d   :  { %497 = vrot.lane.b32.xlu1 %v491_v9, %s643_s3  ;;  %487 = vrot.lane.b32.xlu0 %v481_v10, %s643_s3  ;;  %503 = vpow2.f32 %v342_v21  ;;  %v391_v46 = vadd.f32 %v385_v40, %v241_v39  ;;  %v375_v50 = vsub.f32 1.0, %v685_v4  ;;  %v374_v56 = vsub.f32 1.0, %v683_v3  ;;  %p612_p9 = por %p611_p8, %p610_p7 }
  0x3e   :  { %505 = vpow2.f32 %v192_v23  ;;  %v198_v57 = vmax.f32 %v196_v42, 0.0  ;;  %v199_v61 = vmax.f32 %v197_v45, 0.0  ;;  %v230_v22 = vsub.f32 1.0, %v687_v5 }
  0x3f   :  { %507 = vpow2.f32 %v194_v24  ;;  %v415_v52 = vrot.slane %v391_v46, 4  ;;  %v231_v23 = vsub.f32 1.0, %v689_v6  ;;  %p613_p10 = pnand %p612_p9, %p606_p6 }
  0x41   :  { %v416_v62 = vadd.f32 %v415_v52, %v391_v46 }
  0x43   :  { %v417_v16 = vrot.slane %v416_v62, 2 }
  0x49   :  { %v502_v25 = vpop.eup %501 }
  0x4a   :  { %v504_v26 = vpop.eup %503  ;;  %v348_v27 = vadd.f32 1.0, %v502_v25  ;;  %v358_v28 = vsel %vm356_vm0, 1.0, %v502_v25 }
  0x4b   :  { %v506_v29 = vpop.eup %505  ;;  %v349_v30 = vadd.f32 1.0, %v504_v26  ;;  %v359_v31 = vsel %vm357_vm1, 1.0, %v504_v26 }
  0x4c   :  { %v508_v32 = vpop.eup %507  ;;  %509 = vlog2.f32 %v348_v27  ;;  %v200_v33 = vadd.f32 1.0, %v506_v29  ;;  %v210_v35 = vsel %vm208_vm2, 1.0, %v506_v29 }
  0x4d   :  { %511 = vlog2.f32 %v349_v30  ;;  %v201_v34 = vadd.f32 1.0, %v508_v32  ;;  %v211_v36 = vsel %vm209_vm3, 1.0, %v508_v32 }
  0x4e   :  { %513 = vrcp.f32 %v348_v27 }
  0x4f   :  { %515 = vrcp.f32 %v349_v30 }
  0x50   :  { %517 = vlog2.f32 %v200_v33 }
  0x51   :  { %519 = vlog2.f32 %v201_v34 }
  0x52   :  { %521 = vrcp.f32 %v200_v33 }
  0x53   :  { %523 = vrcp.f32 %v201_v34 }
  0x59   :  { %v510_v43 = vpop.eup %509 }
  0x5a   :  { %v512_v47 = vpop.eup %511  ;;  %v351_v48 = vmul.f32 0.6931472, %v510_v43 }
  0x5b   :  { %v514_v49 = vpop.eup %513  ;;  %v353_v51 = vmul.f32 0.6931472, %v512_v47 }
  0x5c   :  { %v516_v53 = vpop.eup %515  ;;  %v354_v54 = vadd.f32 %v351_v48, %v346_v41  ;;  %v720_v55 = vmul.f32 %v514_v49, %v358_v28  ;;  %v418_v28 = vadd.f32 %v417_v16, %v416_v62 }
  0x5d   :  { %v518_v58 = vpop.eup %517  ;;  %v355_v59 = vadd.f32 %v353_v51, %v347_v44  ;;  %v723_v60 = vmul.f32 %v516_v53, %v359_v31 }
  0x5e   :  { %v520_v63 = vpop.eup %519  ;;  %v376_v1 = vadd.f32 %v354_v54, %v691_v7  ;;  %v203_v2 = vmul.f32 0.6931472, %v518_v58  ;;  %v372_v9 = vmul.f32 %v683_v3, %v354_v54  ;;  %v419_v34 = vrot.slane %v418_v28, 1 }
  0x5f   :  { %v522_v10 = vpop.eup %521  ;;  %v377_v12 = vadd.f32 %v355_v59, %v693_v8  ;;  %v205_v13 = vmul.f32 0.6931472, %v520_v63  ;;  %v373_v15 = vmul.f32 %v685_v4, %v355_v59  ;;  %v74_v54 = vlaneseq }
  0x60   :  { %v524_v17 = vpop.eup %523  ;;  %v378_v19 = vmul.f32 %v376_v1, %v374_v56  ;;  %v206_v20 = vadd.f32 %v203_v2, %v198_v57  ;;  %v731_v21 = vmul.f32 %v522_v10, %v210_v35  ;;  %v420_v38 = vadd.f32 %v419_v34, %v418_v28  ;;  %v454_v57 = vld [vmem:[#allocation2] ss:$0 sm:$0xff] }
  0x61   :  { %v379_v7 = vmul.f32 %v377_v12, %v375_v50  ;;  %v207_v24 = vadd.f32 %v205_v13, %v199_v61  ;;  %v735_v25 = vmul.f32 %v524_v17, %v211_v36  ;;  %v386_v27 = vadd.f32 %v373_v15, %v372_v9 }
  0x62   :  { %v232_v8 = vadd.f32 %v206_v20, %v699_v11  ;;  %v228_v26 = vmul.f32 %v687_v5, %v206_v20  ;;  %v380_v31 = vmul.f32 %v729_v18, %v378_v19  ;;  %421 = vst [vmem:[#allocation10 + $0x3] sm:$0x1] %v420_v38  ;;  %v745_v59 = vshrl.u32 %v74_v54, 7  ;;  %v455_v19 = vld [vmem:[#allocation2 + $0x1] ss:$0 sm:$0xff] }
  0x63   :  { %v233_v29 = vadd.f32 %v207_v24, %v703_v14  ;;  %v229_v30 = vmul.f32 %v689_v6, %v207_v24  ;;  %v381_v32 = vmul.f32 %v729_v18, %v379_v7  ;;  %v253_v20 = vld [vmem:[#allocation8 + $0x4] sm:$0xf] }
  0x64   :  { %v234_v33 = vmul.f32 %v232_v8, %v230_v22  ;;  %v748_v10 = vadd.s32 8, %v745_v59  ;;  %vm77_vm4 = vcmp.eq.s32.totalorder %v745_v59, 0  ;;  %vm118_vm5 = vcmp.lt.s32.totalorder %v745_v59, 1 }
  0x65   :  { %v235_v35 = vmul.f32 %v233_v29, %v231_v23  ;;  %v242_v37 = vadd.f32 %v229_v30, %v228_v26  ;;  %v387_v39 = vadd.f32 %v381_v32, %v380_v31  ;;  %v127_v15 = vsub.s32 0, %v745_v59 }
  0x66   :  { %v236_v36 = vmul.f32 %v729_v18, %v234_v33  ;;  %v142_v16 = vsub.s32 2, %v745_v59  ;;  %v152_v17 = vsub.s32 1, %v745_v59  ;;  %vm133_vm6 = vcmp.lt.s32.totalorder %v745_v59, 7 }
  0x67   :  { %v237_v11 = vmul.f32 %v729_v18, %v235_v35  ;;  %v392_v40 = vadd.f32 %v386_v27, %v242_v37  ;;  %vm80_vm7 = vcmp.eq.s32.totalorder %v748_v10, 15  ;;  %v162_v33 = vsub.s32 3, %v745_v59 }
  0x68   :  { %v281_v34 = vrot.slane %v253_v20, %v127_v15  ;;  %v291_v35 = vrot.slane %v253_v20, %v142_v16  ;;  %v301_v37 = vrot.slane %v253_v20, %v152_v17 }
  0x69   :  { %v243_v41 = vadd.f32 %v237_v11, %v236_v36  ;;  %v422_v14 = vrot.slane %v392_v40, 4 }
  0x6b   :  { %v393_v42 = vadd.f32 %v387_v39, %v243_v41  ;;  %v423_v43 = vadd.f32 %v422_v14, %v392_v40 }
  0x6d   :  { %v424_v44 = vrot.slane %v423_v43, 2  ;;  %v429_v45 = vrot.slane %v393_v42, 4 }
  0x6f   :  { %v425_v46 = vadd.f32 %v424_v44, %v423_v43  ;;  %v430_v47 = vadd.f32 %v429_v45, %v393_v42 }
  0x71   :  { %v426_v48 = vrot.slane %v425_v46, 1  ;;  %v431_v49 = vrot.slane %v430_v47, 2 }
  0x73   :  { %v427_v50 = vadd.f32 %v426_v48, %v425_v46  ;;  %v432_v51 = vadd.f32 %v431_v49, %v430_v47  ;;  %v87_v47 = vld [vmem:[#allocation8] sm:$0xf]  ;;  %v311_v48 = vrot.slane %v253_v20, %v162_v33 }
  0x75   :  { %428 = vst [vmem:[#allocation10 + $0x4] sm:$0x1] %v427_v50  ;;  %v433_v52 = vrot.slane %v432_v51, 1 }
  0x77   :  { %v434_v53 = vadd.f32 %v433_v52, %v432_v51 }
  0x79   :  { %435 = vst [vmem:[#allocation10 + $0x5] sm:$0x1] %v434_v53 }
  0xab   :  { %v493_v56 = vpop.permute.xlu1 %492  ;;  %v483_v58 = vpop.permute.xlu0 %482 }
  0xac   :  { %v495_v61 = vunpack.i.h.bf16 %v493_v56  ;;  %v494_v62 = vunpack.i.l.bf16 %v493_v56  ;;  %v485_v2 = vunpack.i.h.bf16 %v483_v58  ;;  %v484_v9 = vunpack.i.l.bf16 %v483_v58 }
  0xad   :  { %v128_v58 = vrot.slane %v87_v47, %v127_v15 }
  0xae   :  { %v258_v63 = vmul.f32 %v494_v62, %v454_v57  ;;  %v259_v1 = vmul.f32 %v495_v61, %v454_v57  ;;  %v96_v27 = vmul.f32 %v484_v9, %v454_v57  ;;  %v97_v28 = vmul.f32 %v485_v2, %v454_v57 }
  0xaf   :  { %v498_v12 = vpop.permute.xlu1 %497  ;;  %v488_v13 = vpop.permute.xlu0 %487 }
  0xb0   :  { %v500_v22 = vunpack.i.h.bf16 %v498_v12  ;;  %v499_v7 = vunpack.i.l.bf16 %v498_v12  ;;  %v490_v23 = vunpack.i.h.bf16 %v488_v13  ;;  %v489_v24 = vunpack.i.l.bf16 %v488_v13 }
  0xb1   :  { %v266_v8 = vadd.f32 %v683_v3, %v258_v63  ;;  %v267_v26 = vadd.f32 %v685_v4, %v259_v1  ;;  %v108_v40 = vadd.f32 %v687_v5, %v96_v27  ;;  %v109_v41 = vadd.f32 %v689_v6, %v97_v28 }
  0xb2   :  { %v264_v29 = vmul.f32 %v499_v7, %v455_v19  ;;  %v265_v30 = vmul.f32 %v500_v22, %v455_v19  ;;  %v106_v31 = vmul.f32 %v489_v24, %v455_v19  ;;  %v107_v32 = vmul.f32 %v490_v23, %v455_v19 }
  0xb3   :  { %v153_v7 = vrot.slane %v87_v47, %v152_v17 }
  0xb4   :  { %v268_v36 = vadd.f32 %v266_v8, %v264_v29  ;;  %v269_v38 = vadd.f32 %v267_v26, %v265_v30  ;;  %v270_v11 = vmax.f32 %v258_v63, %v264_v29  ;;  %v271_v39 = vmax.f32 %v259_v1, %v265_v30 }
  0xb5   :  { %v112_v14 = vmax.f32 %v96_v27, %v106_v31  ;;  %v113_v42 = vmax.f32 %v97_v28, %v107_v32  ;;  %v766_v51 = vadd.f32 %v108_v40, %v106_v31  ;;  %v770_v56 = vadd.f32 %v109_v41, %v107_v32 }
  0xb6   :  { %v272_v43 = vmax.f32 %v683_v3, %v270_v11  ;;  %v273_v44 = vmax.f32 %v685_v4, %v271_v39  ;;  %v274_v45 = vrot.slane %v268_v36, 7  ;;  %v275_v46 = vrot.slane %v269_v38, 7 }
  0xb7   :  { %v284_v49 = vrot.slane %v268_v36, 1  ;;  %v285_v50 = vrot.slane %v269_v38, 1  ;;  %v114_v61 = vmax.f32 %v687_v5, %v112_v14  ;;  %v115_v62 = vmax.f32 %v689_v6, %v113_v42 }
  0xb8   :  { %v277_v52 = vsel %vm118_vm5, %v275_v46, %v274_v45  ;;  %v294_v53 = vrot.slane %v272_v43, 7  ;;  %v295_v54 = vrot.slane %v273_v44, 7  ;;  %v304_v57 = vrot.slane %v272_v43, 1 }
  0xb9   :  { %v276_v63 = vsel %vm118_vm5, %v274_v45, %v275_v46  ;;  %v282_v1 = vsel %vm77_vm4, %v281_v34, %v277_v52  ;;  %v305_v9 = vrot.slane %v273_v44, 1  ;;  %v287_v12 = vsel %vm133_vm6, %v285_v50, %v284_v49 }
  0xba   :  { %v297_v2 = vsel %vm118_vm5, %v295_v54, %v294_v53  ;;  %v296_v13 = vsel %vm118_vm5, %v294_v53, %v295_v54  ;;  %v116_v19 = vrot.slane %v766_v51, 7  ;;  %v117_v23 = vrot.slane %v770_v56, 7 }
  0xbb   :  { %v302_v15 = vsel %vm77_vm4, %v301_v37, %v297_v2  ;;  %v306_v20 = vsel %vm133_vm6, %v304_v57, %v305_v9  ;;  %v307_v22 = vsel %vm133_vm6, %v305_v9, %v304_v57  ;;  %v314_v8 = vadd.f32 %v282_v1, %v268_v36 }
  0xbc   :  { %v313_v24 = vsel %vm80_vm7, %v311_v48, %v307_v22  ;;  %v315_v26 = vadd.f32 %v276_v63, %v269_v38  ;;  %v318_v27 = vmax.f32 %v302_v15, %v306_v20  ;;  %v286_v28 = vsel %vm133_vm6, %v284_v49, %v285_v50 }
  0xbd   :  { %v293_v29 = vsel %vm80_vm7, %v291_v35, %v287_v12  ;;  %v319_v30 = vmax.f32 %v296_v13, %v313_v24  ;;  %v163_v31 = vrot.slane %v87_v47, %v162_v33  ;;  %v120_v17 = vsel %vm118_vm5, %v117_v23, %v116_v19 }
  0xbe   :  { %v320_v32 = vmax.f32 %v272_v43, %v318_v27  ;;  %v146_v34 = vrot.slane %v114_v61, 7  ;;  %v147_v37 = vrot.slane %v115_v62, 7  ;;  %v131_v39 = vrot.slane %v766_v51, 1 }
  0xbf   :  { %v321_v11 = vmax.f32 %v273_v44, %v319_v30  ;;  %v132_v36 = vrot.slane %v770_v56, 1  ;;  %v156_v38 = vrot.slane %v114_v61, 1  ;;  %v316_v40 = vadd.f32 %v314_v8, %v286_v28 }
  0xc0   :  { %v317_v41 = vadd.f32 %v315_v26, %v293_v29  ;;  %v322_v14 = vmul.f32 9.0, %v320_v32  ;;  %v149_v35 = vsel %vm118_vm5, %v147_v37, %v146_v34  ;;  %v129_v33 = vsel %vm77_vm4, %v128_v58, %v120_v17 }
  0xc1   :  { %v323_v42 = vmul.f32 9.0, %v321_v11  ;;  %v154_v43 = vsel %vm77_vm4, %v153_v7, %v149_v35  ;;  %v157_v45 = vrot.slane %v115_v62, 1  ;;  %v143_v46 = vrot.slane %v87_v47, %v142_v16 }
  0xc2   :  { %v324_v44 = vsub.f32 %v322_v14, %v316_v40  ;;  %v119_v48 = vsel %vm118_vm5, %v116_v19, %v117_v23  ;;  %v148_v49 = vsel %vm118_vm5, %v146_v34, %v147_v37  ;;  %v135_v52 = vsel %vm133_vm6, %v132_v36, %v131_v39 }
  0xc3   :  { %v325_v50 = vsub.f32 %v323_v42, %v317_v41  ;;  %v158_v53 = vsel %vm133_vm6, %v156_v38, %v157_v45  ;;  %v159_v54 = vsel %vm133_vm6, %v157_v45, %v156_v38  ;;  %v166_v47 = vadd.f32 %v129_v33, %v766_v51 }
  0xc4   :  { %vm326_vm8 = vcmp.gt.f32.partialorder %v324_v44, 0.9  ;;  %v165_v16 = vsel %vm80_vm7, %v163_v31, %v159_v54  ;;  %v170_v57 = vmax.f32 %v154_v43, %v158_v53  ;;  %v167_v63 = vadd.f32 %v119_v48, %v770_v56 }
  0xc5   :  { %vm327_vm9 = vcmp.gt.f32.partialorder %v325_v50, 0.9  ;;  %v459_v58 = vsel %vm326_vm8, 1.0, %v641_v0  ;;  %v171_v1 = vmax.f32 %v148_v49, %v165_v16  ;;  %v145_v12 = vsel %vm80_vm7, %v143_v46, %v135_v52 }
  0xc6   :  { %v460_v2 = vsel %vm327_vm9, 1.0, %v641_v0  ;;  %v332_v9 = vmul.f32 2.0, %v459_v58  ;;  %v172_v13 = vmax.f32 %v114_v61, %v170_v57  ;;  %v134_v19 = vsel %vm133_vm6, %v131_v39, %v132_v36 }
  0xc7   :  { %v333_v15 = vmul.f32 2.0, %v460_v2  ;;  %v173_v20 = vmax.f32 %v115_v62, %v171_v1  ;;  %v168_v22 = vadd.f32 %v166_v47, %v134_v19  ;;  %v169_v24 = vadd.f32 %v167_v63, %v145_v12 }
  0xc8   :  { %v334_v51 = vadd.f32 1.0, %v332_v9  ;;  %v174_v7 = vmul.f32 9.0, %v172_v13 }
  0xc9   :  { %v335_v23 = vadd.f32 1.0, %v333_v15  ;;  %v175_v8 = vmul.f32 9.0, %v173_v20 }
  0xca   :  { %v364_v56 = vmul.f32 %v683_v3, %v334_v51  ;;  %v366_v26 = vmul.f32 %v720_v55, %v334_v51  ;;  %v176_v27 = vsub.f32 %v174_v7, %v168_v22 }
  0xcb   :  { %v365_v10 = vmul.f32 %v685_v4, %v335_v23  ;;  %v367_v61 = vmul.f32 %v723_v60, %v335_v23  ;;  %v177_v28 = vsub.f32 %v175_v8, %v169_v24 }
  0xcc   :  { %v368_v59 = vmul.f32 %v729_v18, %v366_v26  ;;  %v370_v62 = vmul.f32 %v364_v56, %v720_v55  ;;  %vm178_vm10 = vcmp.gt.f32.partialorder %v176_v27, 0.9 }
  0xcd   :  { %v369_v29 = vmul.f32 %v729_v18, %v367_v61  ;;  %v371_v30 = vmul.f32 %v365_v10, %v723_v60  ;;  %vm179_vm11 = vcmp.gt.f32.partialorder %v177_v28, 0.9  ;;  %v456_v3 = vsel %vm178_vm10, 1.0, %v641_v0 }
  0xce   :  { %v457_v31 = vsel %vm179_vm11, 1.0, %v641_v0  ;;  %v184_v4 = vmul.f32 2.0, %v456_v3  ;;  %v382_v60 = vadd.f32 %v365_v10, %v364_v56 }
  0xcf   :  { %v383_v32 = vadd.f32 %v369_v29, %v368_v59  ;;  %v384_v17 = vadd.f32 %v371_v30, %v370_v62  ;;  %v185_v34 = vmul.f32 2.0, %v457_v31 }
  0xd0   :  { %v186_v37 = vadd.f32 1.0, %v184_v4 }
  0xd1   :  { %v187_v11 = vadd.f32 1.0, %v185_v34 }
  0xd2   :  { %v216_v39 = vmul.f32 %v687_v5, %v186_v37  ;;  %v218_v36 = vmul.f32 %v731_v21, %v186_v37 }
  0xd3   :  { %v217_v55 = vmul.f32 %v689_v6, %v187_v11  ;;  %v219_v38 = vmul.f32 %v735_v25, %v187_v11 }
  0xd4   :  { %v224_v40 = vmul.f32 %v729_v18, %v218_v36  ;;  %v226_v0 = vmul.f32 %v216_v39, %v731_v21 }
  0xd5   :  { %v225_v41 = vmul.f32 %v729_v18, %v219_v38  ;;  %v227_v14 = vmul.f32 %v217_v55, %v735_v25  ;;  %v238_v35 = vadd.f32 %v217_v55, %v216_v39 }
  0xd7   :  { %v239_v42 = vadd.f32 %v225_v41, %v224_v40  ;;  %v240_v33 = vadd.f32 %v227_v14, %v226_v0  ;;  %v388_v43 = vadd.f32 %v382_v60, %v238_v35 }
  0xd9   :  { %v389_v5 = vadd.f32 %v383_v32, %v239_v42  ;;  %v390_v45 = vadd.f32 %v384_v17, %v240_v33  ;;  %v394_v6 = vrot.slane %v388_v43, 4 }
  0xdb   :  { %v401_v44 = vrot.slane %v389_v5, 4  ;;  %v408_v46 = vrot.slane %v390_v45, 4  ;;  %v395_v48 = vadd.f32 %v394_v6, %v388_v43 }
  0xdd   :  { %v402_v49 = vadd.f32 %v401_v44, %v389_v5  ;;  %v409_v50 = vadd.f32 %v408_v46, %v390_v45  ;;  %v396_v52 = vrot.slane %v395_v48, 2 }
  0xdf   :  { %v403_v53 = vrot.slane %v402_v49, 2  ;;  %v410_v54 = vrot.slane %v409_v50, 2  ;;  %v397_v18 = vadd.f32 %v396_v52, %v395_v48 }
  0xe1   :  { %v404_v16 = vadd.f32 %v403_v53, %v402_v49  ;;  %v411_v21 = vadd.f32 %v410_v54, %v409_v50  ;;  %v398_v47 = vrot.slane %v397_v18, 1 }
  0xe3   :  { %v405_v25 = vrot.slane %v404_v16, 1  ;;  %v412_v57 = vrot.slane %v411_v21, 1  ;;  %v399_v58 = vadd.f32 %v398_v47, %v397_v18 }
  0xe5   :  { %v406_v63 = vadd.f32 %v405_v25, %v404_v16  ;;  %v413_v1 = vadd.f32 %v412_v57, %v411_v21  ;;  %400 = vst [vmem:[#allocation10] sm:$0x1] %v399_v58 }
  0xe7   :  { %407 = vst [vmem:[#allocation10 + $0x1] sm:$0x1] %v406_v63  ;;  %414 = vst [vmem:[#allocation10 + $0x2] sm:$0x1] %v413_v1 }
  0xe8   :  { %616 = shalt.err (!%p613_p10)
}
  0xe9   :  { %446 = dma.vmem_to_hbm [thread:$0]  %s444_s12, 128, %s855_s4, [#allocation4]  }
  0xea   :  { %631 = dma.done.wait [#allocation4], 128  }
  0xeb   :  { %632 = vsyncadd [#allocation4], 4294967168 }
  0xec   :  { %450 = vsyncpa [#allocation3], 1 }
  0xed   :  { %451 = vsyncpa [#allocation6], 1 }
  0xee   :  { %452 = vsyncpa [#allocation9], 1 }
  0xef   :  { %453 = vsyncpa [#allocation4], 1 }

</bundles_post_ra>
